<compile_context>
chip_gen: v7x
topology: tpu7x:2x2x1
jax: 0.10.0
libtpu: 0.0.40
codegen_flags: <defaults>
</compile_context>

<pallas_src>
import functools

import jax
import jax.numpy as jnp
from jax import lax
from jax.experimental import pallas as pl
from jax.experimental.pallas import tpu as pltpu

PARAGRAPH_IN_DIM = 128     # embedding vocab size
PARAGRAPH_OUT_DIM = 32     # embedding / output feature dim
_BATCH_TILE = 2048         # default batch tile (sweep 2048-8192 per gen)
_XLA_FALLBACK_ROWS = 256   # below this, plain fused XLA beats a pallas_call


def _fused_kernel(content_ref, ewb_ref, wext_ref, out_ref, *, vocab):
    """out = onehot(content[:,0]) @ (EW + b)  +  content @ W_ext.

    No gather, no concat, no title slice: the embedding lookup is one MXU
    dot against the (bias-folded) folded table, and the title path reuses
    the full content tile against a zero-extended weight.
    """
    c = content_ref[...]                                       # [TB, 1+D] f32
    ids = c[:, 0:1].astype(jnp.int32)                          # truncate, == torch .to(int64)
    iota = lax.broadcasted_iota(jnp.int32, (c.shape[0], vocab), 1)
    onehot = (ids == iota).astype(jnp.float32)                 # [TB, V]
    acc = jnp.dot(onehot, ewb_ref[...],
                  preferred_element_type=jnp.float32)          # [TB, D]
    acc = acc + jnp.dot(c, wext_ref[...],
                        preferred_element_type=jnp.float32)    # [TB, D]
    out_ref[...] = acc


def fold_params(emb_table, fc_w_t, fc_b):
    """Fold embedding table + bias through the FC weight (done once, in XLA).

    EWB   = emb_table @ fc_w_t[:D] + bias        -> [V, D]   (bias ok: 1-hot rows sum to 1)
    W_ext = concat([zeros(1, D), fc_w_t[D:]])    -> [1+D, D]  (content @ W_ext == title @ W_bot)
    """
    d_out = fc_w_t.shape[1]
    ewb = jnp.dot(emb_table, fc_w_t[:d_out, :],
                  preferred_element_type=jnp.float32) + fc_b
    w_ext = jnp.concatenate(
        [jnp.zeros((1, d_out), fc_w_t.dtype), fc_w_t[d_out:, :]], axis=0)
    return ewb, w_ext


def _round_up(x, m):
    return ((x + m - 1) // m) * m


def _choose_batch_tile(batch, batch_tile):
    if batch <= 8:
        return batch                       # full-extent block, no (8,·) issue
    # Keep >= 2 grid steps where possible so v7x's two TensorCores both get
    # work (harmless on single-TC v5e/v6e); round to the 8-row sublane size.
    half = _round_up(-(-batch // 2), 8)
    return max(8, min(_round_up(batch_tile, 8), half))


def query_combined_features_forward(content, emb_table, fc_w_t, fc_b, *,
                                    batch_tile=_BATCH_TILE,
                                    xla_fallback_rows=_XLA_FALLBACK_ROWS):
    """content: [B, 1+D] f32; emb_table: [V, D]; fc_w_t: [2D, D]; fc_b: [1, D].

    Returns [B, D] f32.  NOTE: ids are reconstructed from the float column of
    `content`; out-of-range ids yield an all-zero one-hot row (embedding and
    bias contribution dropped) whereas torch's Embedding would error.
    """
    vocab, d_out = emb_table.shape
    batch, width = content.shape
    assert width == 1 + d_out, "content must be [B, 1 + paragraph_out_dim]"

    ewb, w_ext = fold_params(emb_table, fc_w_t, fc_b)

    if batch <= xla_fallback_rows:
        # Tiny-B: pallas_call dispatch + DMA setup dominate ~KBs of work;
        # use the same two-term fused form in plain XLA.
        ids = content[:, 0].astype(jnp.int32)
        return jnp.take(ewb, ids, axis=0) + content @ w_ext

    tb = _choose_batch_tile(batch, batch_tile)
    nb = pl.cdiv(batch, tb)
    kernel = functools.partial(_fused_kernel, vocab=vocab)

    return pl.pallas_call(
        kernel,
        out_shape=jax.ShapeDtypeStruct((batch, d_out), jnp.float32),
        grid=(nb,),
        in_specs=[
            pl.BlockSpec((tb, width), lambda i: (i, 0)),       # content tile
            pl.BlockSpec((vocab, d_out), lambda i: (0, 0)),    # EW + bias (resident)
            pl.BlockSpec((width, d_out), lambda i: (0, 0)),    # zero-extended W_bot
        ],
        out_specs=pl.BlockSpec((tb, d_out), lambda i: (i, 0)),
        compiler_params=pltpu.CompilerParams(
            dimension_semantics=("parallel",)),
    )(content, ewb, w_ext)


def init_params(key):
    """Deterministic init matching the PyTorch module's init_weights()."""
    initrange = 1.0 / 11.3
    k_emb, k_fc = jax.random.split(key)
    emb_table = jax.random.uniform(
        k_emb, (PARAGRAPH_IN_DIM, PARAGRAPH_OUT_DIM),
        minval=-initrange, maxval=initrange, dtype=jnp.float32)
    # PyTorch Linear weight is [out, in]; keep the transposed [in, out] form.
    fc_w = jax.random.uniform(
        k_fc, (PARAGRAPH_OUT_DIM, PARAGRAPH_OUT_DIM * 2),
        minval=-initrange, maxval=initrange, dtype=jnp.float32)
    fc_w_t = fc_w.T                                             # [2D, D]
    fc_b = jnp.zeros((1, PARAGRAPH_OUT_DIM), dtype=jnp.float32)
    return emb_table, fc_w_t, fc_b


def reference_forward(content, emb_table, fc_w_t, fc_b):
    """Pure-JAX reference mirroring the PyTorch forward (take + concat + fc)."""
    ids = content[:, 0].astype(jnp.int32)
    title = content[:, 1:]
    item_feat = jnp.take(emb_table, ids, axis=0)
    combined = jnp.concatenate([item_feat, title], axis=1)
    return combined @ fc_w_t + fc_b


def _make_content(k_ids, k_title, batch):
    item_ids = jax.random.randint(k_ids, (batch,), 0, PARAGRAPH_IN_DIM)
    title_vec = jax.random.normal(k_title, (batch, PARAGRAPH_OUT_DIM),
                                  dtype=jnp.float32)
    return jnp.concatenate(
        [item_ids.astype(jnp.float32)[:, None], title_vec], axis=1)


if __name__ == "__main__":
    key = jax.random.PRNGKey(0)
    k_params, k1, k2, k3, k4 = jax.random.split(key, 5)
    emb_table, fc_w_t, fc_b = init_params(k_params)

    # --- small batch, single-step Pallas path (force past the XLA fallback) --
    content_a = _make_content(k1, k2, 8)                        # [8, 33]
    out_a = query_combined_features_forward(
        content_a, emb_table, fc_w_t, fc_b, xla_fallback_rows=0)
    out_a = jax.block_until_ready(out_a)
    ref_a = reference_forward(content_a, emb_table, fc_w_t, fc_b)
    assert out_a.shape == (8, PARAGRAPH_OUT_DIM)
    assert jnp.allclose(out_a, ref_a, atol=1e-5, rtol=1e-5), "mismatch (small path)"

    # --- ragged batch, 2-step gridded path (partial last block, no jnp.pad) --
    content_b = _make_content(k3, k4, 20)                       # [20, 33]
    out_b = query_combined_features_forward(
        content_b, emb_table, fc_w_t, fc_b, xla_fallback_rows=0)
    out_b = jax.block_until_ready(out_b)
    ref_b = reference_forward(content_b, emb_table, fc_w_t, fc_b)
    assert out_b.shape == (20, PARAGRAPH_OUT_DIM)
    assert jnp.allclose(out_b, ref_b, atol=1e-5, rtol=1e-5), "mismatch (grid path)"

    # --- default tiny-batch XLA fallback agrees as well -----------------------
    out_c = jax.block_until_ready(
        query_combined_features_forward(content_a, emb_table, fc_w_t, fc_b))
    assert jnp.allclose(out_c, ref_a, atol=1e-5, rtol=1e-5), "mismatch (xla fallback)"

    print("KERNEL_OK")
</pallas_src>

<mosaic_0001>
module attributes {stable_mosaic.version = 11 : i64} {
  func.func @_fused_kernel(%arg0: i32, %arg1: memref<8x33xf32, #tpu.memory_space<vmem>>, %arg2: memref<128x32xf32, #tpu.memory_space<vmem>>, %arg3: memref<33x32xf32, #tpu.memory_space<vmem>>, %arg4: memref<8x32xf32, #tpu.memory_space<vmem>>) attributes {dimension_semantics = [#tpu.dimension_semantics<parallel>], iteration_bounds = array<i64: 1>, scalar_prefetch = 0 : i64, scratch_operands = 0 : i64, tpu.core_type = #tpu.core_type<tc>, window_params = [{transform_indices = @transform_0, window_bounds = array<i64: 8, 33>}, {pipeline_mode = #tpu.pipeline_mode<synchronous>, transform_indices = @transform_1, window_bounds = array<i64: 128, 32>}, {pipeline_mode = #tpu.pipeline_mode<synchronous>, transform_indices = @transform_2, window_bounds = array<i64: 33, 32>}, {transform_indices = @transform_3, window_bounds = array<i64: 8, 32>}]} {
    %c0 = arith.constant 0 : index
    %c0_0 = arith.constant 0 : index
    %0 = vector.load %arg1[%c0, %c0_0] : memref<8x33xf32, #tpu.memory_space<vmem>>, vector<8x33xf32>
    %1 = vector.extract_strided_slice %0 {offsets = [0, 0], sizes = [8, 1], strides = [1, 1]} : vector<8x33xf32> to vector<8x1xf32>
    %2 = arith.fptosi %1 : vector<8x1xf32> to vector<8x1xi32>
    %3 = tpu.iota {dimensions = array<i32: 1>} : vector<8x128xi32>
    %4 = vector.broadcast %2 : vector<8x1xi32> to vector<8x128xi32>
    %5 = arith.cmpi eq, %4, %3 : vector<8x128xi32>
    %6 = arith.extui %5 : vector<8x128xi1> to vector<8x128xi32>
    %7 = arith.sitofp %6 : vector<8x128xi32> to vector<8x128xf32>
    %c0_1 = arith.constant 0 : index
    %c0_2 = arith.constant 0 : index
    %8 = vector.load %arg2[%c0_1, %c0_2] : memref<128x32xf32, #tpu.memory_space<vmem>>, vector<128x32xf32>
    %cst = arith.constant dense<0.000000e+00> : vector<8x32xf32>
    %9 = tpu.matmul %7, %8, %cst {dimension_numbers = #tpu.dot_dimension_numbers<[1], [0], [0], [1], [0, 0, 1, 1], [], []>} : vector<8x128xf32>, vector<128x32xf32>, vector<8x32xf32> -> vector<8x32xf32>
    %c0_3 = arith.constant 0 : index
    %c0_4 = arith.constant 0 : index
    %10 = vector.load %arg3[%c0_3, %c0_4] : memref<33x32xf32, #tpu.memory_space<vmem>>, vector<33x32xf32>
    %cst_5 = arith.constant dense<0.000000e+00> : vector<8x32xf32>
    %11 = tpu.matmul %0, %10, %cst_5 {dimension_numbers = #tpu.dot_dimension_numbers<[1], [0], [0], [1], [0, 0, 1, 1], [], []>} : vector<8x33xf32>, vector<33x32xf32>, vector<8x32xf32> -> vector<8x32xf32>
    %12 = arith.addf %9, %11 : vector<8x32xf32>
    %c0_6 = arith.constant 0 : index
    %c0_7 = arith.constant 0 : index
    %13 = vector.load %arg4[%c0_6, %c0_7] : memref<8x32xf32, #tpu.memory_space<vmem>>, vector<8x32xf32>
    tpu.vector_store %arg4[%c0_6, %c0_7], %12 {strides = array<i32>} : memref<8x32xf32, #tpu.memory_space<vmem>>, vector<8x32xf32>,
    return
  }
  func.func @transform_0(%arg0: i32) -> (i32, i32) {
    %c0_i32 = arith.constant 0 : i32
    %c0_i32_0 = arith.constant 0 : i32
    return %arg0, %c0_i32 : i32, i32
  }
  func.func @transform_1(%arg0: i32) -> (i32, i32) {
    %c0_i32 = arith.constant 0 : i32
    %c0_i32_0 = arith.constant 0 : i32
    %c0_i32_1 = arith.constant 0 : i32
    return %c0_i32, %c0_i32_0 : i32, i32
  }
  func.func @transform_2(%arg0: i32) -> (i32, i32) {
    %c0_i32 = arith.constant 0 : i32
    %c0_i32_0 = arith.constant 0 : i32
    %c0_i32_1 = arith.constant 0 : i32
    return %c0_i32, %c0_i32_0 : i32, i32
  }
  func.func @transform_3(%arg0: i32) -> (i32, i32) {
    %c0_i32 = arith.constant 0 : i32
    %c0_i32_0 = arith.constant 0 : i32
    return %arg0, %c0_i32 : i32, i32
  }
}

</mosaic_0001>

<bundles_post_ra>
// kernel: tpu_custom_call.1
= control target key start
LH: loop header
LB: loop body
LE: loop exit
PB: predicated region body
PF: predicated region fallthrough
CT: control target
= control target key end

     0   :  { %v349_v3 = vmov 0   ;;  %v350_v5 = vmov 0.0|0.0   ;;  %vm351_vm0 = vmmov 0   ;;  %v352_v9 = vmov 0.0   ;;  %s453_s0 = inlined_call_operand.vmem [shape: f32[8,33], index: 0, kind: input, shape index: {}]   ;;  %s454_s1 = inlined_call_operand.vmem [shape: f32[128,32], index: 1, kind: input, shape index: {}]   ;;  %s455_s2 = inlined_call_operand.vmem [shape: f32[33,32], index: 2, kind: input, shape index: {}]   ;;  %s456_s3 = inlined_call_operand.hbm [shape: f32[8,32], index: 3, kind: output, shape index: {}]  }
   0x1   :  { %v15_v0 = vld [vmem:[%s453_s0] sm:$0xff]  ;;  %v26_v2 = vld [vmem:[%s454_s1 + $0x8] sm:$0xff]  ;;  %324 = vset.pattern.permute.xlu0 %v349_v3  ;;  %291 = vmatprep.subr.bf16.mxu0 %v350_v5  ;;  %v27_v7 = vld [vmem:[%s454_s1 + $0x10] sm:$0xff] }
   0x2   :  { %v25_v1 = vld [vmem:[%s454_s1] sm:$0xff]  ;;  %v316_v4 = vtrunc.f32 %v15_v0  ;;  %v28_v8 = vld [vmem:[%s454_s1 + $0x18] sm:$0xff]  ;;  %285 = vmatprep.subr.bf16.mxu1 %v350_v5  ;;  %247 = vmatprep.mubr.msk.f32.mxu1 %vm351_vm0, %v352_v9  ;;  %v30_v13 = vld [vmem:[%s454_s1 + $0x28] sm:$0xff] }
   0x3   :  { %v292_v6 = vpack.c.bf16 %v26_v2, %v25_v1  ;;  %v295_v11 = vpack.c.bf16 %v28_v8, %v27_v7  ;;  %v29_v12 = vld [vmem:[%s454_s1 + $0x20] sm:$0xff]  ;;  %282 = vmatprep.mubr.msk.f32.mxu0 %vm351_vm0, %v352_v9  ;;  %v42_v15 = vld [vmem:[%s455_s2 + $0x8] sm:$0xff]  ;;  %v43_v17 = vld [vmem:[%s455_s2 + $0x10] sm:$0xff] }
   0x4   :  { %v317_v10 = vcvt.f32.s32 %v316_v4  ;;  %v41_v14 = vld [vmem:[%s455_s2] sm:$0xff]  ;;  %v44_v18 = vld [vmem:[%s455_s2 + $0x18] sm:$0xff]  ;;  %v298_v19 = vpack.c.bf16 %v30_v13, %v29_v12 }
   0x5   :  { %293 = vmatpush3.bf16.msra.mxu0 %v292_v6  ;;  %v286_v16 = vpack.c.bf16 %v42_v15, %v41_v14  ;;  %v289_v20 = vpack.c.bf16 %v44_v18, %v43_v17 }
   0x6   :  { %294 = vmatprep.subr.bf16.mxu0 %v350_v5  ;;  %20 = vperm.xlu0 %324, %v317_v10  }
   0x7   :  { %287 = vmatpush3.bf16.msra.mxu1 %v286_v16 }
   0x9   :  { %296 = vmatpush3.bf16.msra.mxu0 %v295_v11 }
   0xa   :  { %8 = vsyncpa [#allocation3], 0  ;;  %297 = vmatprep.subr.bf16.mxu0 %v350_v5  ;;  %v31_v21 = vld [vmem:[%s454_s1 + $0x30] sm:$0xff]  ;;  %v32_v22 = vld [vmem:[%s454_s1 + $0x38] sm:$0xff]  ;;  %288 = vmatprep.subr.bf16.mxu1 %v350_v5  ;;  %vm50_vm1 = vcmask 1040384   ;;  %vm46_vm2 = vcmask 269312   ;;  %v17_v37 = vlaneseq }
   0xb   :  { %v301_v23 = vpack.c.bf16 %v32_v22, %v31_v21  ;;  %290 = vmatpush3.bf16.msra.mxu1 %v289_v20  ;;  %v33_v24 = vld [vmem:[%s454_s1 + $0x40] sm:$0xff]  ;;  %v34_v25 = vld [vmem:[%s454_s1 + $0x48] sm:$0xff]  ;;  %v35_v28 = vld [vmem:[%s454_s1 + $0x50] sm:$0xff]  ;;  %v353_v40 = vmov 1.0   ;;  %s354_s26 = smov [#allocation2]   ;;  %vm194_vm4 = vcmask 261120  }
   0xc   :  { %245 = vmatprep.subr.mxu1 %v352_v9  ;;  %v45_v26 = vld [vmem:[%s455_s2 + $0x20] sm:$0x1]  ;;  %v304_v27 = vpack.c.bf16 %v34_v25, %v33_v24  ;;  %v36_v29 = vld [vmem:[%s454_s1 + $0x58] sm:$0xff]  ;;  %v38_v32 = vld [vmem:[%s454_s1 + $0x68] sm:$0xff]  ;;  %v18_v38 = vand.u32 127, %v17_v37  ;;  %s202_s27 = sshll.u32 %s354_s26, 4  ;;  %s203_s27 = int_to_ptr.vmem [resolvable:$true] %s202_s27 }
   0xd   :  { %299 = vmatpush3.bf16.msra.mxu0 %v298_v19  ;;  %v307_v30 = vpack.c.bf16 %v36_v29, %v35_v28  ;;  %v37_v31 = vld [vmem:[%s454_s1 + $0x60] sm:$0xff]  ;;  %v39_v34 = vld [vmem:[%s454_s1 + $0x70] sm:$0xff]  ;;  %v40_v35 = vld [vmem:[%s454_s1 + $0x78] sm:$0xff]  ;;  %s325_s1 = scalar_lea.vmem %s203_s27, 128  ;;  %p330_p1 = scmp.lt.s32.totalorder %s203_s27, %s203_s27 }
   0xe   :  { %300 = vmatprep.subr.bf16.mxu0 %v350_v5  ;;  %v310_v33 = vpack.c.bf16 %v38_v32, %v37_v31  ;;  %v313_v36 = vpack.c.bf16 %v40_v35, %v39_v34  ;;  %p326_p0 = scmp.ne.s32.totalorder %s203_s27, %s325_s1  ;;  %p331_p2 = scmp.lt.s32.totalorder %s325_s1, %s325_s1 }
   0xf   :  { %246 = vmatpush3.msk.msra.mxu1 %vm50_vm1, %v45_v26 }
  0x10   :  { %248 = vmatmul.mubr.msk.f32.vlgmr.msra.gmra.mrb[0].mxu1 %vm46_vm2, %v15_v0  ;;  %p332_p3 = por %p331_p2, %p330_p1 }
  0x11   :  { %302 = vmatpush3.bf16.msra.mxu0 %v301_v23 }
  0x12   :  { %303 = vmatprep.subr.bf16.mxu0 %v350_v5  ;;  %p333_p4 = pnand %p332_p3, %p326_p0 }
  0x15   :  { %305 = vmatpush3.bf16.msra.mxu0 %v304_v27 }
  0x16   :  { %306 = vmatprep.subr.bf16.mxu0 %v350_v5 }
  0x19   :  { %308 = vmatpush3.bf16.msra.mxu0 %v307_v30 }
  0x1a   :  { %309 = vmatprep.subr.bf16.mxu0 %v350_v5 }
  0x1d   :  { %311 = vmatpush3.bf16.msra.mxu0 %v310_v33 }
  0x1e   :  { %312 = vmatprep.subr.bf16.mxu0 %v350_v5 }
  0x21   :  { %314 = vmatpush3.bf16.msra.mxu0 %v313_v36 }
  0x85   :  { %v21_v39 = vpop.permute.xlu0 %20 }
  0x86   :  { %vm22_vm3 = vcmp.eq.s32.totalorder %v21_v39, %v18_v38 }
  0x87   :  { %283 = vmatmul.mubr.msk.f32.vlgmr.msra.gmra.mrb[0].mxu0 %vm22_vm3, %v353_v40 }
  0xe3   :  { %v120_v41 = vpop.f32.mrb[0].mxu1 }
  0xe4   :  { %v249_v42 = vpop.f32.mrb[1].mxu1 }
 0x15a   :  { %v190_v43 = vpop.f32.mrb[0].mxu0 }
 0x15b   :  { %v191_v44 = vadd.f32 %v190_v43, %v120_v41  ;;  %v284_v45 = vpop.f32.mrb[1].mxu0 }
 0x15d   :  { %195 = vst.msk [vmem:[#allocation2] sm:$0xff] %vm194_vm4, %v191_v44 }
 0x15e   :  { %336 = shalt.err (!%p333_p4)
}
 0x15f   :  { %s337_s30 = scalar_lea.hbm %s456_s3, 128 }
 0x160   :  { %p338_p5 = scmp.ne.s32.totalorder %s456_s3, %s337_s30  ;;  %p341_p6 = scmp.lt.u32.totalorder %s337_s30, %s456_s3 }
 0x162   :  { %p343_p7 = pnand %p341_p6, %p338_p5 }
 0x164   :  { %346 = shalt.err (!%p343_p7)
}
 0x165   :  { %205 = dma.vmem_to_hbm [thread:$0]  %s203_s27, 128, %s456_s3, [#allocation3]  }
 0x166   :  { %347 = dma.done.wait [#allocation3], 128  }
 0x167   :  { %348 = vsyncadd [#allocation3], 4294967168 }
 0x168   :  { %209 = vsyncpa [#allocation3], 1 }

</bundles_post_ra>
